<compile_context>
chip_gen: v7x
topology: tpu7x:2x2x1
jax: 0.10.0
libtpu: 0.0.40
codegen_flags: <defaults>
</compile_context>

<pallas_src>
import jax
import jax.numpy as jnp
from jax.experimental import pallas as pl
from jax.experimental.pallas import tpu as pltpu


# PyTorch LSTM gate order within W_ih / W_hh rows is (i, f, g, o).
# We pack gate-major in the order (i, f, o, g) so the tanh gate sits last.
_GATE_ORDER = (0, 1, 3, 2)


def _bilstm_seq_kernel(xg_ref, whh_ref, hc0_ref, out_ref, hcn_ref, h_sc, c_sc):
    t = pl.program_id(0)
    T = pl.num_programs(0)
    H2 = h_sc.shape[-1]                      # 2H (both directions on lanes)

    @pl.when(t == 0)
    def _init():
        h_sc[...] = hc0_ref[:, 0:H2]         # [h_fwd | h_bwd]
        c_sc[...] = hc0_ref[:, H2:2 * H2]    # [c_fwd | c_bwd]

    h_cat = h_sc[...]                        # (B, 2H)
    c_cat = c_sc[...]                        # (B, 2H)

    # gates(t) = packed input gates (+biases) + [h_fwd|h_bwd] @ blockdiag(Whh)
    gates = xg_ref[...] + jnp.dot(h_cat, whh_ref[...],
                                  preferred_element_type=jnp.float32)  # (B, 8H)

    # Full vreg-width transcendentals, then contiguous lane slices only.
    # Packed column order: [i_f,i_b | f_f,f_b | o_f,o_b | g_f,g_b].
    sig = jax.nn.sigmoid(gates)
    th = jnp.tanh(gates)
    i_g = sig[:, 0 * H2:1 * H2]
    f_g = sig[:, 1 * H2:2 * H2]
    o_g = sig[:, 2 * H2:3 * H2]
    g_g = th[:, 3 * H2:4 * H2]

    c_new = f_g * c_cat + i_g * g_g          # (B, 2H)
    h_new = o_g * jnp.tanh(c_new)            # (B, 2H)

    h_sc[...] = h_new
    c_sc[...] = c_new

    # Forward half is in time order; backward half is in reversed time order
    # (un-reversed by the wrapper).  Single full-block store per step.
    out_ref[...] = h_new

    @pl.when(t == T - 1)
    def _final():
        hcn_ref[...] = jnp.concatenate([h_new, c_new], axis=-1)   # (B, 4H)


def _encoder_lstm_seq(xg, w_hh_blk, hc0):
    """Run the whole bidirectional recurrence in one pallas_call."""
    T, B, eightH = xg.shape
    H2 = eightH // 4                          # 2H
    out_shapes = (
        jax.ShapeDtypeStruct((T, B, H2), jnp.float32),      # per-step [h_f | h_b]
        jax.ShapeDtypeStruct((B, 2 * H2), jnp.float32),     # packed final (h, c)
    )
    return pl.pallas_call(
        _bilstm_seq_kernel,
        out_shape=out_shapes,
        grid=(T,),
        in_specs=[
            # single packed per-step gate block (forward t / backward pre-reversed)
            pl.BlockSpec((None, B, eightH), lambda t: (t, 0, 0)),
            # fused recurrent weight + packed initial state: constant block
            # index -> DMA'd once, VMEM-resident for the whole grid.
            pl.BlockSpec((H2, eightH), lambda t: (0, 0)),
            pl.BlockSpec((B, 2 * H2), lambda t: (0, 0)),
        ],
        out_specs=(
            pl.BlockSpec((None, B, H2), lambda t: (t, 0, 0)),
            pl.BlockSpec((B, 2 * H2), lambda t: (0, 0)),
        ),
        scratch_shapes=[
            pltpu.VMEM((B, H2), jnp.float32),   # carried h = [h_fwd | h_bwd]
            pltpu.VMEM((B, H2), jnp.float32),   # carried c = [c_fwd | c_bwd]
        ],
        compiler_params=pltpu.CompilerParams(
            dimension_semantics=("arbitrary",)),   # sequential recurrence
    )(xg, w_hh_blk, hc0)


def _pack_gate_columns(xg_f, xg_b_rev, H):
    """Pack (T,B,4H) per-direction gate tables (PyTorch order i,f,g,o) into a
    single (T,B,8H) table ordered [i_f,i_b, f_f,f_b, o_f,o_b, g_f,g_b]."""
    pieces = []
    for g in _GATE_ORDER:
        pieces.append(xg_f[..., g * H:(g + 1) * H])
        pieces.append(xg_b_rev[..., g * H:(g + 1) * H])
    return jnp.concatenate(pieces, axis=-1)


def _make_whh_block(w_hh_f, w_hh_b, H):
    """Column-permuted blockdiag(W_hh_fwd^T, W_hh_bwd^T), shape (2H, 8H)."""
    blk = jnp.zeros((2 * H, 8 * H), jnp.float32)
    for slot, g in enumerate(_GATE_ORDER):
        blk = blk.at[0:H, (2 * slot) * H:(2 * slot + 1) * H].set(
            w_hh_f[g * H:(g + 1) * H, :].T)
        blk = blk.at[H:2 * H, (2 * slot + 1) * H:(2 * slot + 2) * H].set(
            w_hh_b[g * H:(g + 1) * H, :].T)
    return blk


@jax.jit
def _encoder_forward(embedding, w_ih_f, w_ih_b, b_f, b_b, w_hh_blk,
                     input_ids, h0, c0):
    """Embedding lookup + input-side gate projections (batched matmuls) in XLA,
    sequential bidirectional recurrence in the Pallas kernel."""
    H = w_hh_blk.shape[0] // 2

    emb = jnp.take(embedding, input_ids, axis=0)                    # (B, T, E)
    xg_f = jnp.einsum("bte,ge->btg", emb, w_ih_f) + b_f             # (B, T, 4H)
    xg_b = jnp.einsum("bte,ge->btg", emb, w_ih_b) + b_b
    xg_f = jnp.transpose(xg_f, (1, 0, 2))                           # (T, B, 4H)
    xg_b_rev = jnp.transpose(xg_b, (1, 0, 2))[::-1]                 # time-reversed
    xg = _pack_gate_columns(xg_f, xg_b_rev, H)                      # (T, B, 8H)

    hc0 = jnp.concatenate([h0[0], h0[1], c0[0], c0[1]], axis=-1)    # (B, 4H)

    out_tm, hcn = _encoder_lstm_seq(xg, w_hh_blk, hc0)

    out_f = out_tm[:, :, 0:H]                 # forward hidden, time order
    out_b = out_tm[::-1, :, H:2 * H]          # backward hidden, un-reversed
    output = jnp.transpose(jnp.concatenate([out_f, out_b], axis=-1),
                           (1, 0, 2))                               # (B, T, 2H)

    h_n = jnp.stack([hcn[:, 0:H], hcn[:, H:2 * H]], axis=0)         # (2, B, H)
    c_n = jnp.stack([hcn[:, 2 * H:3 * H], hcn[:, 3 * H:4 * H]], axis=0)
    return output, h_n, c_n


class EncoderRNNPallas:
    """JAX/Pallas mirror of the PyTorch EncoderRNN forward pass."""

    def __init__(self, input_size, embedding_size, hidden_size,
                 batch_size=16, n_layers=1, key=jax.random.PRNGKey(0)):
        assert n_layers == 1, "kernel implements the single-layer bidirectional LSTM"
        self.input_size = input_size
        self.embedding_size = embedding_size
        self.hidden_size = hidden_size
        self.n_layers = n_layers
        self.batch_size = batch_size

        V, E, H = input_size, embedding_size, hidden_size
        ks = jax.random.split(key, 9)
        scale = 0.1

        def w(k, shape):
            return scale * jax.random.normal(k, shape, jnp.float32)

        # nn.Embedding weight (init_weights() uses uniform(-0.1, 0.1))
        self.embedding = jax.random.uniform(ks[0], (V, E), jnp.float32, -0.1, 0.1)
        # PyTorch LSTM layout: weight_ih (4H, E), weight_hh (4H, H); gates i,f,g,o
        self.w_ih_f = w(ks[1], (4 * H, E))
        self.w_hh_f = w(ks[2], (4 * H, H))
        self.b_ih_f = w(ks[3], (4 * H,))
        self.b_hh_f = w(ks[4], (4 * H,))
        self.w_ih_b = w(ks[5], (4 * H, E))
        self.w_hh_b = w(ks[6], (4 * H, H))
        self.b_ih_b = w(ks[7], (4 * H,))
        self.b_hh_b = w(ks[8], (4 * H,))

        # Fused, gate-major column-permuted blockdiag recurrent weight (2H, 8H).
        self.w_hh_blk = _make_whh_block(self.w_hh_f, self.w_hh_b, H)
        # Folded biases (b_ih + b_hh), absorbed into the precomputed input gates.
        self.b_f = self.b_ih_f + self.b_hh_f
        self.b_b = self.b_ih_b + self.b_hh_b

    def init_hidden(self, inputs):
        shape = (self.n_layers * 2, inputs.shape[0], self.hidden_size)
        return (jnp.zeros(shape, jnp.float32), jnp.zeros(shape, jnp.float32))

    def forward(self, input_ids, last_hidden):
        # input_ids: (B, T) int32; last_hidden: (h0, c0), each (2, B, H)
        h0, c0 = last_hidden
        output, h_n, c_n = _encoder_forward(
            self.embedding, self.w_ih_f, self.w_ih_b, self.b_f, self.b_b,
            self.w_hh_blk, input_ids, h0, c0)
        return output, (h_n, c_n)


def _reference_forward(model, input_ids, last_hidden):
    """Pure-JAX (non-Pallas) bidirectional LSTM reference."""
    B, T = input_ids.shape
    H = model.hidden_size
    emb = jnp.take(model.embedding, input_ids, axis=0)   # (B, T, E)
    h0, c0 = last_hidden

    def run_direction(xs, w_ih, w_hh, b_ih, b_hh, h, c):
        outs = []
        for x in xs:
            gates = x @ w_ih.T + h @ w_hh.T + b_ih + b_hh
            i = jax.nn.sigmoid(gates[:, 0:H])
            f = jax.nn.sigmoid(gates[:, H:2 * H])
            g = jnp.tanh(gates[:, 2 * H:3 * H])
            o = jax.nn.sigmoid(gates[:, 3 * H:4 * H])
            c = f * c + i * g
            h = o * jnp.tanh(c)
            outs.append(h)
        return outs, h, c

    xs = [emb[:, s, :] for s in range(T)]
    outs_f, hf, cf = run_direction(xs, model.w_ih_f, model.w_hh_f,
                                   model.b_ih_f, model.b_hh_f, h0[0], c0[0])
    outs_b_rev, hb, cb = run_direction(xs[::-1], model.w_ih_b, model.w_hh_b,
                                       model.b_ih_b, model.b_hh_b, h0[1], c0[1])
    outs_b = outs_b_rev[::-1]
    output = jnp.stack(
        [jnp.concatenate([of, ob], axis=-1) for of, ob in zip(outs_f, outs_b)],
        axis=1)                                           # (B, T, 2H)
    h_n = jnp.stack([hf, hb], axis=0)
    c_n = jnp.stack([cf, cb], axis=0)
    return output, (h_n, c_n)


if __name__ == "__main__":
    V, E, H, B, T = 64, 32, 32, 8, 8   # 4H = 128 per direction -> lane-dense packing

    model = EncoderRNNPallas(input_size=V, embedding_size=E, hidden_size=H,
                             batch_size=B, key=jax.random.PRNGKey(0))

    kd = jax.random.split(jax.random.PRNGKey(0), 3)
    input_ids = jax.random.randint(kd[0], (B, T), 0, V, dtype=jnp.int32)
    # Small nonzero initial states so the hc0 path is exercised
    # (init_hidden() gives the usual zero states and also works).
    h0 = 0.1 * jax.random.normal(kd[1], (2, B, H), jnp.float32)
    c0 = 0.1 * jax.random.normal(kd[2], (2, B, H), jnp.float32)
    last_hidden = (h0, c0)

    output, (h_n, c_n) = model.forward(input_ids, last_hidden)
    jax.block_until_ready((output, h_n, c_n))

    ref_out, (ref_h, ref_c) = _reference_forward(model, input_ids, last_hidden)

    assert output.shape == (B, T, 2 * H)
    assert h_n.shape == (2, B, H) and c_n.shape == (2, B, H)
    assert jnp.allclose(output, ref_out, atol=2e-3, rtol=2e-3)
    assert jnp.allclose(h_n, ref_h, atol=2e-3, rtol=2e-3)
    assert jnp.allclose(c_n, ref_c, atol=2e-3, rtol=2e-3)

    print("KERNEL_OK")
</pallas_src>

<mosaic_0001>
module attributes {stable_mosaic.version = 11 : i64} {
  func.func @_bilstm_seq_kernel(%arg0: i32, %arg1: memref<1x8x256xf32, #tpu.memory_space<vmem>>, %arg2: memref<64x256xf32, #tpu.memory_space<vmem>>, %arg3: memref<8x128xf32, #tpu.memory_space<vmem>>, %arg4: memref<1x8x64xf32, #tpu.memory_space<vmem>>, %arg5: memref<8x128xf32, #tpu.memory_space<vmem>>, %arg6: memref<8x64xf32, #tpu.memory_space<vmem>>, %arg7: memref<8x64xf32, #tpu.memory_space<vmem>>) attributes {dimension_semantics = [#tpu.dimension_semantics<arbitrary>], iteration_bounds = array<i64: 8>, scalar_prefetch = 0 : i64, scratch_operands = 2 : i64, tpu.core_type = #tpu.core_type<tc>, window_params = [{transform_indices = @transform_0, window_bounds = array<i64: 1, 8, 256>}, {pipeline_mode = #tpu.pipeline_mode<synchronous>, transform_indices = @transform_1, window_bounds = array<i64: 64, 256>}, {pipeline_mode = #tpu.pipeline_mode<synchronous>, transform_indices = @transform_2, window_bounds = array<i64: 8, 128>}, {transform_indices = @transform_3, window_bounds = array<i64: 1, 8, 64>}, {pipeline_mode = #tpu.pipeline_mode<synchronous>, transform_indices = @transform_4, window_bounds = array<i64: 8, 128>}]} {
    %c0_i32 = arith.constant 0 : i32
    %0 = arith.cmpi eq, %arg0, %c0_i32 : i32
    %1 = arith.extui %0 : i1 to i32
    %c0_i32_0 = arith.constant 0 : i32
    %2 = arith.cmpi ne, %1, %c0_i32_0 : i32
    scf.if %2 {
      %c0_18 = arith.constant 0 : index
      %c0_19 = arith.constant 0 : index
      %33 = vector.load %arg3[%c0_18, %c0_19] : memref<8x128xf32, #tpu.memory_space<vmem>>, vector<8x64xf32>
      %c0_20 = arith.constant 0 : index
      %c0_21 = arith.constant 0 : index
      %34 = vector.load %arg6[%c0_20, %c0_21] : memref<8x64xf32, #tpu.memory_space<vmem>>, vector<8x64xf32>
      tpu.vector_store %arg6[%c0_20, %c0_21], %33 {strides = array<i32>} : memref<8x64xf32, #tpu.memory_space<vmem>>, vector<8x64xf32>,
      %c0_22 = arith.constant 0 : index
      %c64 = arith.constant 64 : index
      %35 = vector.load %arg3[%c0_22, %c64] : memref<8x128xf32, #tpu.memory_space<vmem>>, vector<8x64xf32>
      %c0_23 = arith.constant 0 : index
      %c0_24 = arith.constant 0 : index
      %36 = vector.load %arg7[%c0_23, %c0_24] : memref<8x64xf32, #tpu.memory_space<vmem>>, vector<8x64xf32>
      tpu.vector_store %arg7[%c0_23, %c0_24], %35 {strides = array<i32>} : memref<8x64xf32, #tpu.memory_space<vmem>>, vector<8x64xf32>,
    } else {
    }
    %c0 = arith.constant 0 : index
    %c0_1 = arith.constant 0 : index
    %3 = vector.load %arg6[%c0, %c0_1] : memref<8x64xf32, #tpu.memory_space<vmem>>, vector<8x64xf32>
    %c0_2 = arith.constant 0 : index
    %c0_3 = arith.constant 0 : index
    %4 = vector.load %arg7[%c0_2, %c0_3] : memref<8x64xf32, #tpu.memory_space<vmem>>, vector<8x64xf32>
    %c0_4 = arith.constant 0 : index
    %c0_5 = arith.constant 0 : index
    %c0_6 = arith.constant 0 : index
    %5 = vector.load %arg1[%c0_4, %c0_5, %c0_6] : memref<1x8x256xf32, #tpu.memory_space<vmem>>, vector<1x8x256xf32>
    %6 = vector.shape_cast %5 : vector<1x8x256xf32> to vector<8x256xf32>
    %c0_7 = arith.constant 0 : index
    %c0_8 = arith.constant 0 : index
    %7 = vector.load %arg2[%c0_7, %c0_8] : memref<64x256xf32, #tpu.memory_space<vmem>>, vector<64x256xf32>
    %cst = arith.constant dense<0.000000e+00> : vector<8x256xf32>
    %8 = tpu.matmul %3, %7, %cst {dimension_numbers = #tpu.dot_dimension_numbers<[1], [0], [0], [1], [0, 0, 1, 1], [], []>} : vector<8x64xf32>, vector<64x256xf32>, vector<8x256xf32> -> vector<8x256xf32>
    %9 = arith.addf %6, %8 : vector<8x256xf32>
    %10 = arith.negf %9 : vector<8x256xf32>
    %11 = math.exp %10 : vector<8x256xf32>
    %cst_9 = arith.constant 1.000000e+00 : f32
    %12 = vector.broadcast %cst_9 : f32 to vector<8x256xf32>
    %13 = arith.addf %12, %11 : vector<8x256xf32>
    %14 = arith.divf %12, %13 : vector<8x256xf32>
    %15 = math.tanh %9 : vector<8x256xf32>
    %16 = vector.extract_strided_slice %14 {offsets = [0, 0], sizes = [8, 64], strides = [1, 1]} : vector<8x256xf32> to vector<8x64xf32>
    %17 = vector.extract_strided_slice %14 {offsets = [0, 64], sizes = [8, 64], strides = [1, 1]} : vector<8x256xf32> to vector<8x64xf32>
    %18 = vector.extract_strided_slice %14 {offsets = [0, 128], sizes = [8, 64], strides = [1, 1]} : vector<8x256xf32> to vector<8x64xf32>
    %19 = vector.extract_strided_slice %15 {offsets = [0, 192], sizes = [8, 64], strides = [1, 1]} : vector<8x256xf32> to vector<8x64xf32>
    %20 = arith.mulf %17, %4 : vector<8x64xf32>
    %21 = arith.mulf %16, %19 : vector<8x64xf32>
    %22 = arith.addf %20, %21 : vector<8x64xf32>
    %23 = math.tanh %22 : vector<8x64xf32>
    %24 = arith.mulf %18, %23 : vector<8x64xf32>
    %c0_10 = arith.constant 0 : index
    %c0_11 = arith.constant 0 : index
    %25 = vector.load %arg6[%c0_10, %c0_11] : memref<8x64xf32, #tpu.memory_space<vmem>>, vector<8x64xf32>
    tpu.vector_store %arg6[%c0_10, %c0_11], %24 {strides = array<i32>} : memref<8x64xf32, #tpu.memory_space<vmem>>, vector<8x64xf32>,
    %c0_12 = arith.constant 0 : index
    %c0_13 = arith.constant 0 : index
    %26 = vector.load %arg7[%c0_12, %c0_13] : memref<8x64xf32, #tpu.memory_space<vmem>>, vector<8x64xf32>
    tpu.vector_store %arg7[%c0_12, %c0_13], %22 {strides = array<i32>} : memref<8x64xf32, #tpu.memory_space<vmem>>, vector<8x64xf32>,
    %c0_14 = arith.constant 0 : index
    %c0_15 = arith.constant 0 : index
    %c0_16 = arith.constant 0 : index
    %27 = vector.load %arg4[%c0_14, %c0_15, %c0_16] : memref<1x8x64xf32, #tpu.memory_space<vmem>>, vector<1x8x64xf32>
    %28 = vector.shape_cast %27 : vector<1x8x64xf32> to vector<8x64xf32>
    %29 = vector.shape_cast %24 : vector<8x64xf32> to vector<1x8x64xf32>
    tpu.vector_store %arg4[%c0_14, %c0_15, %c0_16], %29 {strides = array<i32>} : memref<1x8x64xf32, #tpu.memory_space<vmem>>, vector<1x8x64xf32>,
    %c7_i32 = arith.constant 7 : i32
    %30 = arith.cmpi eq, %arg0, %c7_i32 : i32
    %31 = arith.extui %30 : i1 to i32
    %c0_i32_17 = arith.constant 0 : i32
    %32 = arith.cmpi ne, %31, %c0_i32_17 : i32
    scf.if %32 {
      %33 = tpu.concatenate %24, %22 in 1 : vector<8x64xf32>, vector<8x64xf32> -> vector<8x128xf32>
      %c0_18 = arith.constant 0 : index
      %c0_19 = arith.constant 0 : index
      %34 = vector.load %arg5[%c0_18, %c0_19] : memref<8x128xf32, #tpu.memory_space<vmem>>, vector<8x128xf32>
      tpu.vector_store %arg5[%c0_18, %c0_19], %33 {strides = array<i32>} : memref<8x128xf32, #tpu.memory_space<vmem>>, vector<8x128xf32>,
    } else {
    }
    return
  }
  func.func @transform_0(%arg0: i32) -> (i32, i32, i32) {
    %c0_i32 = arith.constant 0 : i32
    %c0_i32_0 = arith.constant 0 : i32
    %c0_i32_1 = arith.constant 0 : i32
    return %arg0, %c0_i32, %c0_i32_0 : i32, i32, i32
  }
  func.func @transform_1(%arg0: i32) -> (i32, i32) {
    %c0_i32 = arith.constant 0 : i32
    %c0_i32_0 = arith.constant 0 : i32
    %c0_i32_1 = arith.constant 0 : i32
    return %c0_i32, %c0_i32_0 : i32, i32
  }
  func.func @transform_2(%arg0: i32) -> (i32, i32) {
    %c0_i32 = arith.constant 0 : i32
    %c0_i32_0 = arith.constant 0 : i32
    %c0_i32_1 = arith.constant 0 : i32
    return %c0_i32, %c0_i32_0 : i32, i32
  }
  func.func @transform_3(%arg0: i32) -> (i32, i32, i32) {
    %c0_i32 = arith.constant 0 : i32
    %c0_i32_0 = arith.constant 0 : i32
    %c0_i32_1 = arith.constant 0 : i32
    return %arg0, %c0_i32, %c0_i32_0 : i32, i32, i32
  }
  func.func @transform_4(%arg0: i32) -> (i32, i32) {
    %c0_i32 = arith.constant 0 : i32
    %c0_i32_0 = arith.constant 0 : i32
    %c0_i32_1 = arith.constant 0 : i32
    return %c0_i32, %c0_i32_0 : i32, i32
  }
}

</mosaic_0001>

<bundles_post_ra>
// kernel: reverse
= control target key start
LH: loop header
LB: loop body
LE: loop exit
PB: predicated region body
PF: predicated region fallthrough
CT: control target
= control target key end

     0   :  { %s104_s0 = inlined_call_operand.vmem [shape: f32[8,8,32], index: 0, kind: input, shape index: {}]   ;;  %s105_s1 = inlined_call_operand.vmem [shape: f32[8,8,32], index: 1, kind: output, shape index: {}]  }
   0x1   :  { %v32_v0 = vld [vmem:[%s104_s0 + $0x38] sm:$0xff]  ;;  %v33_v1 = vld [vmem:[%s104_s0 + $0x30] sm:$0xff]  ;;  %v35_v2 = vld [vmem:[%s104_s0 + $0x28] sm:$0xff] }
   0x2   :  { %4 = vst [vmem:[%s105_s1] sm:$0xff] %v32_v0  ;;  %34 = vst [vmem:[%s105_s1 + $0x8] sm:$0xff] %v33_v1  ;;  %v37_v3 = vld [vmem:[%s104_s0 + $0x20] sm:$0xff]  ;;  %v39_v4 = vld [vmem:[%s104_s0 + $0x18] sm:$0xff] }
   0x3   :  { %36 = vst [vmem:[%s105_s1 + $0x10] sm:$0xff] %v35_v2  ;;  %v41_v5 = vld [vmem:[%s104_s0 + $0x10] sm:$0xff]  ;;  %38 = vst [vmem:[%s105_s1 + $0x18] sm:$0xff] %v37_v3  ;;  %v43_v6 = vld [vmem:[%s104_s0 + $0x8] sm:$0xff] }
   0x4   :  { %40 = vst [vmem:[%s105_s1 + $0x20] sm:$0xff] %v39_v4  ;;  %42 = vst [vmem:[%s105_s1 + $0x28] sm:$0xff] %v41_v5  ;;  %v29_v7 = vld [vmem:[%s104_s0] sm:$0xff] }
   0x5   :  { %44 = vst [vmem:[%s105_s1 + $0x30] sm:$0xff] %v43_v6  ;;  %45 = vst [vmem:[%s105_s1 + $0x38] sm:$0xff] %v29_v7 }

// kernel: _encoder_forward.1
= control target key start
LH: loop header
LB: loop body
LE: loop exit
PB: predicated region body
PF: predicated region fallthrough
CT: control target
= control target key end

     0   :  { %s501_s15 = smov 0   ;;  %s590_s0 = inlined_call_operand.vmem [shape: f32[8,8,256], index: 0, kind: input, shape index: {}]   ;;  %s591_s1 = inlined_call_operand.vmem [shape: f32[64,256], index: 1, kind: input, shape index: {}]   ;;  %s592_s2 = inlined_call_operand.vmem [shape: f32[8,128], index: 2, kind: input, shape index: {}]   ;;  %s593_s3 = inlined_call_operand.vmem [shape: f32[8,8,64], index: 3, kind: output, shape index: {0}]   ;;  %s594_s4 = inlined_call_operand.vmem [shape: f32[8,128], index: 4, kind: output, shape index: {1}]  }
   0x1 LB: > { %s507_s16 = sadd.s32 4294967295, %s471_s15   ;;  %p414_p0 = scmp.ge.s32.totalorder %s471_s15, 1  ;;  %s471_s15 = sphi %s501_s15, %s15_s15  }
   0x2   : > { %p160_p1 = scmp.lt.s32.totalorder %s471_s15, 9 }
   0x4   : > { %p161_p2 = pnand %p414_p0, %p160_p1 }
   0x5   : > { %p185_p3 = scmp.lt.s32.totalorder (!%p161_p2), %s507_s16, 7  ;;  %p418_p4 = scmp.ne.s32.totalorder (!%p161_p2), %s507_s16, 0 }
   0x6   : > { %164 = sbr.rel (%p161_p2) target bundleno = 740 (0x2e4), region = 32 }
   0xd   : > { %s186_s17 = scalar_select %p185_p3, %s507_s16, 7 }
   0xe   : > { %197 = sbr.rel (%p418_p4) target bundleno = 131 (0x83), region = 36  ;;  %v201_v0 = vld [vmem:[%s592_s2] sm:$0xff] (!%p418_p4)  ;;  %vm199_vm0 = vcmask (!%p418_p4), 523264   ;;  %s473_s28 = smov (!%p418_p4), 64  }
   0xf   : > { %s425_s18 = sshll.u32 %s186_s17, 4  ;;  %s417_s19 = sshll.u32 %s186_s17, 3  ;;  %203 = vrot.lane.b32.xlu0 (!%p418_p4), %v201_v0, %s473_s28  ;;  %200 = vst.msk [vmem:[#allocation2] sm:$0xff] (!%p418_p4), %vm199_vm0, %v201_v0 }
  0x10   : > { %s516_s22 = scalar_lea.vmem %s590_s0, %s425_s18  ;;  %s521_s25 = scalar_lea.vmem %s593_s3, %s417_s19 }
  0x81   : > { %v204_v1 = vpop.permute.xlu0 %203 }
  0x82   : > { %206 = vst.msk [vmem:[#allocation3] sm:$0xff] %vm199_vm0, %v204_v1 }
  0x83 PF: > { %v212_v2 = vld [vmem:[%s591_s1 + $0x8] sm:$0xff]  ;;  %v214_v3 = vld [vmem:[%s591_s1 + $0x18] sm:$0xff]  ;;  %v211_v4 = vld [vmem:[%s591_s1] sm:$0xff]  ;;  %v474_v9 = vmov 0.0   ;;  %vm227_vm1 = vcmask 523264   ;;  %s475_s13 = smov 64  }
  0x84   : > { %v426_v5 = vpack.c.bf16 %v214_v3, %v212_v2  ;;  %v213_v6 = vld [vmem:[%s591_s1 + $0x10] sm:$0xff]  ;;  %v216_v7 = vld [vmem:[%s591_s1 + $0x28] sm:$0xff]  ;;  %v218_v8 = vld [vmem:[%s591_s1 + $0x38] sm:$0xff]  ;;  %295 = vmatprep.mubr.f32.mxu0 %v474_v9  ;;  %p422_p5 = scmp.ne.s32.totalorder %s507_s16, 7 }
  0x85   : > { %v428_v10 = vpack.c.bf16 %v213_v6, %v211_v4  ;;  %v430_v11 = vpack.c.bf16 %v218_v8, %v216_v7  ;;  %v215_v12 = vld [vmem:[%s591_s1 + $0x20] sm:$0xff]  ;;  %v217_v13 = vld [vmem:[%s591_s1 + $0x30] sm:$0xff]  ;;  %v220_v14 = vld [vmem:[%s591_s1 + $0x48] sm:$0xff] }
  0x86   : > { %427 = vmatprep.subr.bf16.mxu0 %v426_v5  ;;  %v222_v15 = vld [vmem:[%s591_s1 + $0x58] sm:$0xff]  ;;  %v432_v16 = vpack.c.bf16 %v217_v13, %v215_v12  ;;  %v219_v18 = vld [vmem:[%s591_s1 + $0x40] sm:$0xff]  ;;  %v221_v19 = vld [vmem:[%s591_s1 + $0x50] sm:$0xff] }
  0x87   : > { %429 = vmatpush1.bf16.msra.mxu0 %v428_v10  ;;  %v434_v17 = vpack.c.bf16 %v222_v15, %v220_v14  ;;  %v224_v20 = vld [vmem:[%s591_s1 + $0x68] sm:$0xff]  ;;  %v226_v21 = vld [vmem:[%s591_s1 + $0x78] sm:$0xff]  ;;  %v436_v22 = vpack.c.bf16 %v221_v19, %v219_v18  ;;  %v223_v24 = vld [vmem:[%s591_s1 + $0x60] sm:$0xff] }
  0x88   : > { %431 = vmatprep.subr.bf16.mxu0 %v430_v11  ;;  %v438_v23 = vpack.c.bf16 %v226_v21, %v224_v20  ;;  %v225_v25 = vld [vmem:[%s591_s1 + $0x70] sm:$0xff]  ;;  %v207_v27 = vld [vmem:[#allocation2] sm:$0xff]  ;;  %v210_v28 = vld [vmem:[%s516_s22 + $0x8] sm:$0xff] }
  0x89   : > { %v440_v26 = vpack.c.bf16 %v225_v25, %v223_v24  ;;  %v208_v33 = vld [vmem:[#allocation3] sm:$0xff]  ;;  %v209_v34 = vld [vmem:[%s516_s22] sm:$0xff] }
  0x8b   : > { %433 = vmatpush1.bf16.msra.mxu0 %v432_v16 }
  0x8c   : > { %435 = vmatprep.subr.bf16.mxu0 %v434_v17 }
  0x8f   : > { %437 = vmatpush1.bf16.msra.mxu0 %v436_v22 }
  0x90   : > { %439 = vmatprep.subr.bf16.mxu0 %v438_v23 }
  0x93   : > { %441 = vmatpush1.bf16.msra.mxu0 %v440_v26 }
  0x96   : > { %419 = vmatmul.mubr.msk.f32.vlgmr.msra.gmra.mrb[0].mxu0 %vm227_vm1, %v207_v27 }
 0x169   : > { %v297_v29 = vpop.f32.mrb[0].mxu0 }
 0x16a   : > { %v299_v30 = vpop.f32.mrb[1].mxu0  ;;  %v302_v35 = vadd.f32 %v297_v29, %v209_v34 }
 0x16b   : > { %v303_v31 = vadd.f32 %v299_v30, %v210_v28 }
 0x16c   : > { %v420_v36 = vmul.f32 -1.442695, %v302_v35 }
 0x16d   : > { %453 = vtanh.f32 %v303_v31  ;;  %v421_v47 = vmul.f32 -1.442695, %v303_v31 }
 0x16e   : > { %455 = vpow2.f32 %v420_v36 }
 0x177   : > { %v454_v32 = vpop.eup %453 }
 0x178   : > { %323 = vrot.lane.b32.xlu0 %v454_v32, %s475_s13  ;;  %v456_v37 = vpop.eup %455 }
 0x179   : > { %v310_v38 = vadd.f32 1.0, %v456_v37 }
 0x17b   : > { %457 = vrcp.f32 %v310_v38 }
 0x17c   : > { %318 = vrot.lane.b32.xlu0 %v208_v33, %s475_s13 }
 0x185   : > { %v458_v39 = vpop.eup %457 }
 0x1ea   : > { %v324_v40 = vpop.permute.xlu0 %323 }
 0x1eb   : > { %v326_v41 = vmul.f32 %v458_v39, %v324_v40 }
 0x1ed   : > { %328 = vrot.lane.b32.xlu1 %v326_v41, %s475_s13 }
 0x1ee   : > { %v319_v42 = vpop.permute.xlu0 %318 }
 0x1ef   : > { %v321_v43 = vmul.f32 %v458_v39, %v319_v42 }
 0x25f   : > { %v329_v44 = vpop.permute.xlu1 %328 }
 0x260   : > { %v331_v45 = vadd.f32 %v329_v44, %v321_v43 }
 0x262   : > { %459 = vtanh.f32 %v331_v45  ;;  %340 = vrot.lane.b32.xlu0 %v331_v45, %s475_s13 }
 0x263   : > { %461 = vpow2.f32 %v421_v47 }
 0x26c   : > { %v460_v46 = vpop.eup %459 }
 0x26d   : > { %334 = vrot.lane.b32.xlu1 %v460_v46, %s475_s13  ;;  %v462_v48 = vpop.eup %461 }
 0x26e   : > { %v311_v49 = vadd.f32 1.0, %v462_v48 }
 0x270   : > { %463 = vrcp.f32 %v311_v49 }
 0x27a   : > { %v464_v51 = vpop.eup %463 }
 0x2d4   : > { %v341_v50 = vpop.permute.xlu0 %340 }
 0x2d5   : > { %343 = vst.msk [vmem:[#allocation3] sm:$0xff] %vm227_vm1, %v341_v50 }
 0x2dc   : > { %348 = sbr.rel (%p422_p5) target bundleno = 740 (0x2e4), region = 40 }
 0x2df   : > { %v335_v52 = vpop.permute.xlu1 %334 }
 0x2e0   : > { %v337_v53 = vmul.f32 %v464_v51, %v335_v52 }
 0x2e2   : > { %338 = vst.msk [vmem:[#allocation2] sm:$0xff] %vm227_vm1, %v337_v53  ;;  %344 = vst.msk [vmem:[%s521_s25] sm:$0xff] %vm227_vm1, %v337_v53  ;;  %v349_v54 = vsel (!%p422_p5), %vm227_vm1, %v337_v53, %v331_v45 }
 0x2e3   : > { %350 = vst [vmem:[%s594_s4] sm:$0xff] %v349_v54 }
 0x2e4 PF: > { %s15_s15 = sadd.s32 1, %s471_s15  }
 0x2e5   : > { %p12_p6 = scmp.ge.s32.totalorder %s15_s15, 10  }
 0x2e7   :  { %14 = sbr.rel (!%p12_p6) target bundleno = 1 (0x1), region = 78 }

</bundles_post_ra>
